<compile_context>
chip_gen: v6e
topology: v6e:2x2x1
jax: 0.10.0
libtpu: 0.0.40
codegen_flags: <defaults>
</compile_context>

<pallas_src>
import math

import jax
import jax.numpy as jnp
from jax.experimental import pallas as pl
from jax.experimental.pallas import tpu as pltpu

HIDDEN = 256   # fc1: input_dim -> 256, fc2: 256 -> input_dim
LANE = 128
SUBLANE = 8


def _round_up(n, m):
    return ((n + m - 1) // m) * m


def _mlp_kernel(x_ref, w1_ref, b1_ref, w2_ref, b2_ref, o_ref):
    # fc1 (bf16 on MXU, f32 accumulate) + bias(f32) + ReLU,
    # then fc2 (bf16 on MXU, f32 accumulate) + bias(f32), downcast on store.
    h = jnp.dot(x_ref[...], w1_ref[...], preferred_element_type=jnp.float32)
    h = jnp.maximum(h + b1_ref[...], 0.0)
    y = jnp.dot(h.astype(w2_ref.dtype), w2_ref[...],
                preferred_element_type=jnp.float32)
    o_ref[...] = (y + b2_ref[...]).astype(o_ref.dtype)


def diffusion_forward(x, t, params, *, batch_tile=256, compute_dtype=jnp.bfloat16):
    """Pallas implementation of DiffusionModel.forward.

    x: (B, input_dim) float32
    t: (B,) int32 timesteps -- unused by forward (matches the PyTorch module).
    """
    del t  # unused in forward(), kept for signature parity
    B, D = x.shape
    H = params["w1"].shape[1]

    # Lane-dense feature dim, sublane-aligned batch tiling.
    Dp = _round_up(max(D, LANE), LANE)
    TB = batch_tile if B >= batch_tile else _round_up(B, SUBLANE)
    Bp = _round_up(B, TB)

    # Zero-pad to lane-dense slabs; cast matmul operands to bf16 (f32 accumulation in-kernel).
    xp = jnp.zeros((Bp, Dp), compute_dtype).at[:B, :D].set(x.astype(compute_dtype))
    w1p = jnp.zeros((Dp, H), compute_dtype).at[:D, :].set(params["w1"].astype(compute_dtype))
    w2p = jnp.zeros((H, Dp), compute_dtype).at[:, :D].set(params["w2"].astype(compute_dtype))
    b1 = params["b1"].astype(jnp.float32).reshape(1, H)
    b2p = jnp.zeros((1, Dp), jnp.float32).at[:, :D].set(
        params["b2"].astype(jnp.float32).reshape(1, D))

    grid = (Bp // TB,)
    flops = 2 * Bp * (Dp * H + H * Dp)
    item = jnp.dtype(compute_dtype).itemsize
    bytes_accessed = ((xp.size + w1p.size + w2p.size) * item
                      + (b1.size + b2p.size) * 4
                      + Bp * Dp * 4)

    # TODO(synk): if input_dim grows large in production, tile w1 over a K-reduction grid axis
    # and w2 over an N axis (or raise vmem_limit_bytes) so weight blocks fit v7x's 64 MiB VMEM.
    out = pl.pallas_call(
        _mlp_kernel,
        out_shape=jax.ShapeDtypeStruct((Bp, Dp), jnp.float32),
        grid=grid,
        in_specs=[
            pl.BlockSpec((TB, Dp), lambda i: (i, 0)),   # x tile marches with the batch grid
            pl.BlockSpec((Dp, H), lambda i: (0, 0)),    # weights/biases stay VMEM-resident
            pl.BlockSpec((1, H), lambda i: (0, 0)),
            pl.BlockSpec((H, Dp), lambda i: (0, 0)),
            pl.BlockSpec((1, Dp), lambda i: (0, 0)),
        ],
        out_specs=pl.BlockSpec((TB, Dp), lambda i: (i, 0)),
        compiler_params=pltpu.CompilerParams(dimension_semantics=("parallel",)),
        cost_estimate=pl.CostEstimate(flops=flops, transcendentals=0,
                                      bytes_accessed=bytes_accessed),
    )(xp, w1p, b1, w2p, b2p)

    return out[:B, :D].astype(x.dtype)


def init_params(key, input_dim):
    """Deterministic init mirroring nn.Linear's U(-1/sqrt(fan_in), 1/sqrt(fan_in))."""
    k1, k2, k3, k4 = jax.random.split(key, 4)
    bound1 = 1.0 / math.sqrt(input_dim)
    bound2 = 1.0 / math.sqrt(HIDDEN)
    return {
        # stored transposed relative to PyTorch: (in, out)
        "w1": jax.random.uniform(k1, (input_dim, HIDDEN), jnp.float32, -bound1, bound1),
        "b1": jax.random.uniform(k2, (1, HIDDEN), jnp.float32, -bound1, bound1),
        "w2": jax.random.uniform(k3, (HIDDEN, input_dim), jnp.float32, -bound2, bound2),
        "b2": jax.random.uniform(k4, (1, input_dim), jnp.float32, -bound2, bound2),
    }


def reference_forward(x, params):
    h = jnp.maximum(x @ params["w1"] + params["b1"], 0.0)
    return h @ params["w2"] + params["b2"]


if __name__ == "__main__":
    key = jax.random.PRNGKey(0)
    kx, kt, kp, kx2 = jax.random.split(key, 4)

    B, input_dim = 8, 32
    x = jax.random.normal(kx, (B, input_dim), dtype=jnp.float32)
    t = jax.random.randint(kt, (B,), 0, 1000)  # unused in forward, kept for parity
    params = init_params(kp, input_dim)

    out = jax.block_until_ready(diffusion_forward(x, t, params))
    ref = reference_forward(x, params)
    assert out.shape == (B, input_dim)
    # bf16 operands / f32 accumulation -> tolerance loosened vs. the pure-f32 reference.
    assert jnp.allclose(out, ref, atol=3e-2, rtol=3e-2), "mismatch vs JAX reference (small batch)"

    # Exercise the multi-step batch grid (TB=256 tiles) + megacore path.
    B2 = 512
    x2 = jax.random.normal(kx2, (B2, input_dim), dtype=jnp.float32)
    t2 = jnp.zeros((B2,), jnp.int32)
    out2 = jax.block_until_ready(diffusion_forward(x2, t2, params))
    ref2 = reference_forward(x2, params)
    assert out2.shape == (B2, input_dim)
    assert jnp.allclose(out2, ref2, atol=3e-2, rtol=3e-2), "mismatch vs JAX reference (tiled batch)"

    print("KERNEL_OK")
</pallas_src>

<mosaic_0001>
module attributes {stable_mosaic.version = 11 : i64} {
  func.func @_mlp_kernel(%arg0: i32, %arg1: memref<8x128xbf16, #tpu.memory_space<vmem>>, %arg2: memref<128x256xbf16, #tpu.memory_space<vmem>>, %arg3: memref<1x256xf32, #tpu.memory_space<vmem>>, %arg4: memref<256x128xbf16, #tpu.memory_space<vmem>>, %arg5: memref<1x128xf32, #tpu.memory_space<vmem>>, %arg6: memref<8x128xf32, #tpu.memory_space<vmem>>) attributes {dimension_semantics = [#tpu.dimension_semantics<parallel>], iteration_bounds = array<i64: 1>, scalar_prefetch = 0 : i64, scratch_operands = 0 : i64, tpu.core_type = #tpu.core_type<tc>, window_params = [{transform_indices = @transform_0, window_bounds = array<i64: 8, 128>}, {pipeline_mode = #tpu.pipeline_mode<synchronous>, transform_indices = @transform_1, window_bounds = array<i64: 128, 256>}, {pipeline_mode = #tpu.pipeline_mode<synchronous>, transform_indices = @transform_2, window_bounds = array<i64: 1, 256>}, {pipeline_mode = #tpu.pipeline_mode<synchronous>, transform_indices = @transform_3, window_bounds = array<i64: 256, 128>}, {pipeline_mode = #tpu.pipeline_mode<synchronous>, transform_indices = @transform_4, window_bounds = array<i64: 1, 128>}, {transform_indices = @transform_5, window_bounds = array<i64: 8, 128>}]} {
    %c0 = arith.constant 0 : index
    %c0_0 = arith.constant 0 : index
    %0 = vector.load %arg1[%c0, %c0_0] : memref<8x128xbf16, #tpu.memory_space<vmem>>, vector<8x128xbf16>
    %c0_1 = arith.constant 0 : index
    %c0_2 = arith.constant 0 : index
    %1 = vector.load %arg2[%c0_1, %c0_2] : memref<128x256xbf16, #tpu.memory_space<vmem>>, vector<128x256xbf16>
    %cst = arith.constant dense<0.000000e+00> : vector<8x256xf32>
    %2 = tpu.matmul %0, %1, %cst {dimension_numbers = #tpu.dot_dimension_numbers<[1], [0], [0], [1], [0, 0, 1, 1], [], []>} : vector<8x128xbf16>, vector<128x256xbf16>, vector<8x256xf32> -> vector<8x256xf32>
    %c0_3 = arith.constant 0 : index
    %c0_4 = arith.constant 0 : index
    %3 = vector.load %arg3[%c0_3, %c0_4] : memref<1x256xf32, #tpu.memory_space<vmem>>, vector<1x256xf32>
    %4 = vector.broadcast %3 : vector<1x256xf32> to vector<8x256xf32>
    %5 = arith.addf %2, %4 : vector<8x256xf32>
    %cst_5 = arith.constant 0.000000e+00 : f32
    %6 = vector.broadcast %cst_5 : f32 to vector<8x256xf32>
    %7 = arith.maximumf %5, %6 : vector<8x256xf32>
    %8 = arith.truncf %7 : vector<8x256xf32> to vector<8x256xbf16>
    %c0_6 = arith.constant 0 : index
    %c0_7 = arith.constant 0 : index
    %9 = vector.load %arg4[%c0_6, %c0_7] : memref<256x128xbf16, #tpu.memory_space<vmem>>, vector<256x128xbf16>
    %cst_8 = arith.constant dense<0.000000e+00> : vector<8x128xf32>
    %10 = tpu.matmul %8, %9, %cst_8 {dimension_numbers = #tpu.dot_dimension_numbers<[1], [0], [0], [1], [0, 0, 1, 1], [], []>} : vector<8x256xbf16>, vector<256x128xbf16>, vector<8x128xf32> -> vector<8x128xf32>
    %c0_9 = arith.constant 0 : index
    %c0_10 = arith.constant 0 : index
    %11 = vector.load %arg5[%c0_9, %c0_10] : memref<1x128xf32, #tpu.memory_space<vmem>>, vector<1x128xf32>
    %12 = vector.broadcast %11 : vector<1x128xf32> to vector<8x128xf32>
    %13 = arith.addf %10, %12 : vector<8x128xf32>
    %c0_11 = arith.constant 0 : index
    %c0_12 = arith.constant 0 : index
    %14 = vector.load %arg6[%c0_11, %c0_12] : memref<8x128xf32, #tpu.memory_space<vmem>>, vector<8x128xf32>
    tpu.vector_store %arg6[%c0_11, %c0_12], %13 {strides = array<i32>} : memref<8x128xf32, #tpu.memory_space<vmem>>, vector<8x128xf32>,
    return
  }
  func.func @transform_0(%arg0: i32) -> (i32, i32) {
    %c0_i32 = arith.constant 0 : i32
    %c0_i32_0 = arith.constant 0 : i32
    return %arg0, %c0_i32 : i32, i32
  }
  func.func @transform_1(%arg0: i32) -> (i32, i32) {
    %c0_i32 = arith.constant 0 : i32
    %c0_i32_0 = arith.constant 0 : i32
    %c0_i32_1 = arith.constant 0 : i32
    return %c0_i32, %c0_i32_0 : i32, i32
  }
  func.func @transform_2(%arg0: i32) -> (i32, i32) {
    %c0_i32 = arith.constant 0 : i32
    %c0_i32_0 = arith.constant 0 : i32
    %c0_i32_1 = arith.constant 0 : i32
    return %c0_i32, %c0_i32_0 : i32, i32
  }
  func.func @transform_3(%arg0: i32) -> (i32, i32) {
    %c0_i32 = arith.constant 0 : i32
    %c0_i32_0 = arith.constant 0 : i32
    %c0_i32_1 = arith.constant 0 : i32
    return %c0_i32, %c0_i32_0 : i32, i32
  }
  func.func @transform_4(%arg0: i32) -> (i32, i32) {
    %c0_i32 = arith.constant 0 : i32
    %c0_i32_0 = arith.constant 0 : i32
    %c0_i32_1 = arith.constant 0 : i32
    return %c0_i32, %c0_i32_0 : i32, i32
  }
  func.func @transform_5(%arg0: i32) -> (i32, i32) {
    %c0_i32 = arith.constant 0 : i32
    %c0_i32_0 = arith.constant 0 : i32
    return %arg0, %c0_i32 : i32, i32
  }
}

</mosaic_0001>

<bundles_post_ra>
// kernel: tpu_custom_call.1
= control target key start
LH: loop header
LB: loop body
LE: loop exit
PB: predicated region body
PF: predicated region fallthrough
CT: control target
= control target key end

     0   :  { %10 = vsyncpa [#allocation3], 0  ;;  %s654_s0 = inlined_call_operand.hbm [shape: bf16[8,128], index: 0, kind: input, shape index: {}]   ;;  %s655_s1 = inlined_call_operand.hbm [shape: bf16[128,256], index: 1, kind: input, shape index: {}]   ;;  %s656_s2 = inlined_call_operand.vmem [shape: f32[1,256], index: 2, kind: input, shape index: {}]   ;;  %s657_s3 = inlined_call_operand.hbm [shape: bf16[256,128], index: 3, kind: input, shape index: {}]   ;;  %s658_s4 = inlined_call_operand.vmem [shape: f32[1,128], index: 4, kind: input, shape index: {}]   ;;  %s659_s5 = inlined_call_operand.hbm [shape: f32[8,128], index: 5, kind: output, shape index: {}]  }
   0x1   :  { %11 = vsyncpa [#allocation6], 0 }
   0x2   :  { %12 = vsyncpa [#allocation4], 0  ;;  %s597_s18 = smov [#allocation5]  }
   0x3   :  { %s28_s19 = sshll.u32 %s597_s18, 4  ;;  %s29_s19 = int_to_ptr.vmem [resolvable:$true] %s28_s19 }
   0x4   :  { %s519_s20 = scalar_lea.vmem %s29_s19, 2048  ;;  %p524_p1 = scmp.lt.s32.totalorder %s29_s19, %s29_s19 }
   0x5   :  { %p520_p0 = scmp.ne.s32.totalorder %s29_s19, %s519_s20  ;;  %p525_p2 = scmp.lt.s32.totalorder %s519_s20, %s519_s20 }
   0x7   :  { %p526_p3 = por %p525_p2, %p524_p1 }
   0x9   :  { %p527_p4 = pnand %p526_p3, %p520_p0 }
   0xb   :  { %530 = shalt.err (!%p527_p4)
}
   0xc   :  { %s598_s21 = smov 128   ;;  %s599_s22 = smov 8  }
   0xd   :  { %34 = dma.hbm_to_vmem [thread:$0]  %s655_s1, 2048, %s29_s19, [#allocation6], %s598_s21, %s598_s21, %s599_s22  }
   0xe   :  { %s600_s25 = smov [#allocation2]   ;;  %s601_s27 = smov [#allocation7]  }
   0xf   :  { %s19_s26 = sshll.u32 %s600_s25, 4  ;;  %s42_s28 = sshll.u32 %s601_s27, 4  ;;  %s20_s26 = int_to_ptr.vmem [resolvable:$true] %s19_s26  ;;  %s43_s28 = int_to_ptr.vmem [resolvable:$true] %s42_s28 }
  0x10   :  { %s539_s29 = scalar_lea.vmem %s20_s26, 64  ;;  %p544_p6 = scmp.lt.s32.totalorder %s20_s26, %s20_s26 }
  0x11   :  { %p540_p5 = scmp.ne.s32.totalorder %s20_s26, %s539_s29  ;;  %p545_p7 = scmp.lt.s32.totalorder %s539_s29, %s539_s29 }
  0x13   :  { %p546_p8 = por %p545_p7, %p544_p6 }
  0x15   :  { %p547_p9 = pnand %p546_p8, %p540_p5 }
  0x17   :  { %550 = shalt.err (!%p547_p9)
}
  0x18   :  { %22 = dma.hbm_to_vmem [thread:$0]  %s654_s0, 64, %s20_s26, [#allocation3]  }
  0x19   :  { %s559_s7 = scalar_lea.vmem %s43_s28, 2048  ;;  %p564_p11 = scmp.lt.s32.totalorder %s43_s28, %s43_s28 }
  0x1a   :  { %p560_p10 = scmp.ne.s32.totalorder %s43_s28, %s559_s7  ;;  %p565_p12 = scmp.lt.s32.totalorder %s559_s7, %s559_s7 }
  0x1c   :  { %p566_p13 = por %p565_p12, %p564_p11 }
  0x1e   :  { %p567_p0 = pnand %p566_p13, %p560_p10 }
  0x20   :  { %570 = shalt.err (!%p567_p0)
}
  0x21   :  { %s602_s1 = smov 64   ;;  %s603_s8 = smov 4  }
  0x22   :  { %48 = dma.hbm_to_vmem [thread:$0]  %s657_s3, 2048, %s43_s28, [#allocation6], %s602_s1, %s602_s1, %s603_s8  }
  0x23   :  { %591 = dma.done.wait [#allocation3], 64  }
  0x24   :  { %592 = vsyncadd [#allocation3], 4294967232 }
  0x25   :  { %593 = dma.done.wait [#allocation6], 4096  }
  0x26   :  { %594 = vsyncadd [#allocation6], 4294963200  ;;  %v604_v0 = vmov 0   ;;  %v471_v1 = vld [vmem:[#allocation5 + $0x74] ss:$8 sps:$4 sm:$0xff]   ;;  %v499_v15 = vld [vmem:[#allocation7 + $0x68] sm:$0xff]   ;;  %v80_v34 = vlaneseq }
  0x27   :  { %202 = vmatprep.mubr.bf16.mxu0 %v604_v0  ;;  %v473_v2 = vld [vmem:[#allocation5 + $0x70] ss:$8 sps:$4 sm:$0xff]   ;;  %170 = vmatprep.subr.bf16.mxu0 %v471_v1  ;;  %v474_v3 = vld [vmem:[#allocation5 + $0x64] ss:$8 sps:$4 sm:$0xff]   ;;  %v476_v4 = vld [vmem:[#allocation5 + $0x60] ss:$8 sps:$4 sm:$0xff]  }
  0x28   :  { %171 = vmatpush1.bf16.msra.mxu0 %v473_v2  ;;  %v477_v5 = vld [vmem:[#allocation5 + $0x54] ss:$8 sps:$4 sm:$0xff]   ;;  %v479_v6 = vld [vmem:[#allocation5 + $0x50] ss:$8 sps:$4 sm:$0xff]   ;;  %v480_v7 = vld [vmem:[#allocation5 + $0x44] ss:$8 sps:$4 sm:$0xff]  }
  0x29   :  { %172 = vmatprep.subr.bf16.mxu0 %v474_v3  ;;  %v482_v8 = vld [vmem:[#allocation5 + $0x40] ss:$8 sps:$4 sm:$0xff]   ;;  %v483_v9 = vld [vmem:[#allocation5 + $0x34] ss:$8 sps:$4 sm:$0xff]   ;;  %v485_v12 = vld [vmem:[#allocation5 + $0x30] ss:$8 sps:$4 sm:$0xff]  }
  0x2a   :  { %v495_v10 = vld [vmem:[#allocation7 + $0x78] sm:$0xff]   ;;  %v497_v13 = vld [vmem:[#allocation7 + $0x70] sm:$0xff]   ;;  %v486_v16 = vld [vmem:[#allocation5 + $0x24] ss:$8 sps:$4 sm:$0xff]   ;;  %v81_v35 = vshrl.u32 %v80_v34, 7 }
  0x2b   :  { %v496_v11 = vld [vmem:[#allocation7 + $0x38] sm:$0xff]   ;;  %440 = vmatprep.subr.bf16.mxu1 %v495_v10  ;;  %v498_v14 = vld [vmem:[#allocation7 + $0x30] sm:$0xff]   ;;  %v488_v17 = vld [vmem:[#allocation5 + $0x20] ss:$8 sps:$4 sm:$0xff]  }
  0x2c   :  { %173 = vmatpush1.bf16.msra.mxu0 %v476_v4  ;;  %441 = vmatpush3.bf16.msra.mxu1 %v496_v11  ;;  %v500_v18 = vld [vmem:[#allocation7 + $0x28] sm:$0xff]   ;;  %v501_v19 = vld [vmem:[#allocation7 + $0x60] sm:$0xff]   ;;  %v489_v20 = vld [vmem:[#allocation5 + $0x14] ss:$8 sps:$4 sm:$0xff]   ;;  %v82_v36 = vsub.s32 0, %v81_v35  ;;  %v86_v38 = vsub.s32 1, %v81_v35 }
  0x2d   :  { %174 = vmatprep.subr.bf16.mxu0 %v477_v5  ;;  %442 = vmatprep.subr.bf16.mxu1 %v497_v13  ;;  %v491_v21 = vld [vmem:[#allocation5 + $0x10] ss:$8 sps:$4 sm:$0xff]   ;;  %v492_v22 = vld [vmem:[#allocation5 + $0x4] ss:$8 sps:$4 sm:$0xff]   ;;  %v494_v26 = vld [vmem:[#allocation5] ss:$8 sps:$4 sm:$0xff]  }
  0x2e   :  { %v502_v23 = vld [vmem:[#allocation7 + $0x20] sm:$0xff]   ;;  %v503_v24 = vld [vmem:[#allocation7 + $0x58] sm:$0xff]   ;;  %v505_v27 = vld [vmem:[#allocation7 + $0x50] sm:$0xff]  }
  0x2f   :  { %v504_v25 = vld [vmem:[#allocation7 + $0x18] sm:$0xff]   ;;  %v506_v28 = vld [vmem:[#allocation7 + $0x10] sm:$0xff]   ;;  %v507_v30 = vld [vmem:[#allocation7 + $0x48] sm:$0xff]  }
  0x30   :  { %175 = vmatpush1.bf16.msra.mxu0 %v479_v6  ;;  %443 = vmatpush3.bf16.msra.mxu1 %v498_v14  ;;  %v61_v29 = vld [vmem:[#allocation2] sm:$0xf]  ;;  %v508_v31 = vld [vmem:[#allocation7 + $0x8] sm:$0xff]   ;;  %v509_v32 = vld [vmem:[#allocation7 + $0x40] sm:$0xff]  }
  0x31   :  { %176 = vmatprep.subr.bf16.mxu0 %v480_v7  ;;  %444 = vmatprep.subr.bf16.mxu1 %v499_v15  ;;  %v510_v33 = vld [vmem:[#allocation7] sm:$0xff]   ;;  %v78_v37 = vld [vmem:[%s656_s2] sm:$0x3]  ;;  %s605_s2 = smov [#allocation8]  }
  0x32   :  { %v83_v39 = vrot.slane %v78_v37, %v82_v36  ;;  %v87_v40 = vrot.slane %v78_v37, %v86_v38  ;;  %v423_v52 = vld [vmem:[%s658_s4] ss:$0 sm:$0xff]  ;;  %s397_s13 = sshll.u32 %s605_s2, 4  ;;  %s398_s13 = int_to_ptr.vmem [resolvable:$true] %s397_s13 }
  0x33   :  { %s571_s14 = scalar_lea.vmem %s398_s13, 128  ;;  %p576_p2 = scmp.lt.s32.totalorder %s398_s13, %s398_s13 }
  0x34   :  { %177 = vmatpush1.bf16.msra.mxu0 %v482_v8  ;;  %445 = vmatpush3.bf16.msra.mxu1 %v500_v18  ;;  %p572_p1 = scmp.ne.s32.totalorder %s398_s13, %s571_s14  ;;  %p577_p3 = scmp.lt.s32.totalorder %s571_s14, %s571_s14 }
  0x35   :  { %178 = vmatprep.subr.bf16.mxu0 %v483_v9  ;;  %446 = vmatprep.subr.bf16.mxu1 %v501_v19 }
  0x36   :  { %p578_p4 = por %p577_p3, %p576_p2 }
  0x38   :  { %179 = vmatpush1.bf16.msra.mxu0 %v485_v12  ;;  %447 = vmatpush3.bf16.msra.mxu1 %v502_v23  ;;  %p579_p5 = pnand %p578_p4, %p572_p1 }
  0x39   :  { %180 = vmatprep.subr.bf16.mxu0 %v486_v16  ;;  %448 = vmatprep.subr.bf16.mxu1 %v503_v24 }
  0x3c   :  { %181 = vmatpush1.bf16.msra.mxu0 %v488_v17  ;;  %449 = vmatpush3.bf16.msra.mxu1 %v504_v25 }
  0x3d   :  { %182 = vmatprep.subr.bf16.mxu0 %v489_v20  ;;  %450 = vmatprep.subr.bf16.mxu1 %v505_v27 }
  0x40   :  { %183 = vmatpush1.bf16.msra.mxu0 %v491_v21  ;;  %451 = vmatpush3.bf16.msra.mxu1 %v506_v28 }
  0x41   :  { %184 = vmatprep.subr.bf16.mxu0 %v492_v22  ;;  %452 = vmatprep.subr.bf16.mxu1 %v507_v30 }
  0x44   :  { %185 = vmatpush1.bf16.msra.mxu0 %v494_v26  ;;  %453 = vmatpush3.bf16.msra.mxu1 %v508_v31 }
  0x45   :  { %454 = vmatprep.subr.bf16.mxu1 %v509_v32 }
  0x47   :  { %203 = vmatmul.mubr.bf16.vlgmr.msra.gmra.mxu0 %v61_v29 }
  0x48   :  { %455 = vmatpush3.bf16.msra.mxu1 %v510_v33 }
 0x107   :  { %v204_v41 = vpop.f32.mrf.mxu0 }
 0x108   :  { %v205_v42 = vadd.f32 %v204_v41, %v83_v39 }
 0x109   :  { %v206_v43 = vpop.f32.mrf.mxu0 }
 0x10a   :  { %v207_v44 = vadd.f32 %v206_v43, %v87_v40  ;;  %v211_v45 = vmax.f32 %v205_v42, 0.0 }
 0x10b   :  { %v208_v46 = vpop.f32.mrf.mxu0 }
 0x10c   :  { %v212_v47 = vmax.f32 %v207_v44, 0.0  ;;  %v213_v50 = vpack.c.bf16 %v211_v45, %v211_v45 }
 0x10d   :  { %v209_v48 = vpop.f32.mrf.mxu0 }
 0x10e   :  { %v214_v49 = vpack.c.bf16 %v212_v47, %v212_v47 }
 0x110   :  { %382 = vmatprep.mubr.bf16.mxu1 %v214_v49 }
 0x111   :  { %383 = vmatmul.mubr.bf16.vlgmr.msra.gmra.mxu1 %v213_v50 }
 0x1d1   :  { %v456_v51 = vpop.f32.mrf.mxu1 }
 0x1d3   :  { %v457_v53 = vpop.f32.mrf.mxu1 }
 0x1d4   :  { %v458_v54 = vadd.f32 %v457_v53, %v456_v51 }
 0x1d5   :  { %v459_v55 = vpop.f32.mrf.mxu1 }
 0x1d6   :  { %v385_v56 = vadd.f32 %v458_v54, %v423_v52 }
 0x1d7   :  { %v460_v57 = vpop.f32.mrf.mxu1 }
 0x1d8   :  { %390 = vst [vmem:[#allocation8] sm:$0xff] %v385_v56 }
 0x1d9   :  { %582 = shalt.err (!%p579_p5)
}
 0x1da   :  { %400 = dma.vmem_to_hbm [thread:$0]  %s398_s13, 128, %s659_s5, [#allocation4]  }
 0x1db   :  { %595 = dma.done.wait [#allocation4], 128  }
 0x1dc   :  { %596 = vsyncadd [#allocation4], 4294967168 }
 0x1dd   :  { %404 = vsyncpa [#allocation3], 1 }
 0x1de   :  { %405 = vsyncpa [#allocation6], 1 }
 0x1df   :  { %406 = vsyncpa [#allocation4], 1 }

</bundles_post_ra>
